<compile_context>
chip_gen: v7x
topology: tpu7x:2x2x1
jax: 0.10.0
libtpu: 0.0.40
codegen_flags: <defaults>
</compile_context>

<pallas_src>
import jax
import jax.numpy as jnp
from jax.experimental import pallas as pl
from jax.experimental.pallas import tpu as pltpu


def _norm_kernel_whole(scale_ref, bias_ref, x_ref, o_ref):
    # Whole-array fast path: scale/bias are (R, 1), x/o are (R, HW).
    o_ref[...] = x_ref[...] * scale_ref[...] + bias_ref[...]


def _norm_kernel_tiled(scale_ref, bias_ref, x_ref, o_ref):
    # scale_ref / bias_ref: full (R_pad, 1) VMEM-resident arrays (constant index_map).
    # x_ref / o_ref:        (rows_per_tile, cols_per_tile) lane-dense tiles.
    rpt = x_ref.shape[0]
    r0 = pl.multiple_of(pl.program_id(0) * rpt, 8)
    s = scale_ref[pl.ds(r0, rpt), :]
    b = bias_ref[pl.ds(r0, rpt), :]
    o_ref[...] = x_ref[...] * s + b


def _vmem_capacity_bytes():
    try:
        info = pltpu.get_tpu_info()
        cap = getattr(info, "vmem_capacity_bytes", None)
        if cap:
            return int(cap)
    except Exception:
        pass
    return 64 * 1024 * 1024  # conservative (v7x per-TC physical)


def _round_up(v, m):
    return ((v + m - 1) // m) * m


def imagenet_norm(x, mean, std, *, target_tile_bytes=None,
                  fast_path_max_bytes=4 * 1024 * 1024):
    """Normalize an NCHW f32 tensor with per-channel mean/std (ImageNet norm)."""
    N, C, H, W = x.shape
    R_total = N * C
    HW = H * W
    itemsize = x.dtype.itemsize  # f32 spec; sublane multiple of 8 assumes 32-bit.

    # Generation-aware defaults: big tiles on 128-MiB-VMEM chips, capped on v7x (64 MiB).
    cap = _vmem_capacity_bytes()
    if target_tile_bytes is None:
        if cap >= 96 * 1024 * 1024:          # v5e / v6e
            target_tile_bytes = 8 * 1024 * 1024
            vmem_limit_bytes = 64 << 20
        else:                                 # v7x (64 MiB per TC)
            target_tile_bytes = 4 * 1024 * 1024
            vmem_limit_bytes = 32 << 20
    else:
        vmem_limit_bytes = min(cap, max(32 << 20, 6 * int(target_tile_bytes)))

    # Fold mean/std into scale/bias once (C scalars; the divide happens here).
    scale = (1.0 / std).astype(x.dtype)       # (C,)
    bias = (-mean / std).astype(x.dtype)      # (C,)

    # Lane-dense view: contiguous NCHW -> (N*C, H*W) is a free reshape.
    x2 = x.reshape(R_total, HW)
    scale_flat = jnp.tile(scale, N)           # (R_total,)
    bias_flat = jnp.tile(bias, N)             # (R_total,)

    flops = 2 * N * C * H * W
    bytes_accessed = 2 * R_total * HW * itemsize + 2 * R_total * itemsize
    cost = pl.CostEstimate(flops=flops, bytes_accessed=bytes_accessed,
                           transcendentals=0)

    total_bytes = 2 * R_total * HW * itemsize  # in + out
    if total_bytes <= fast_path_max_bytes:
        # Small-input fast path: whole array as one block, no grid-step overhead.
        # Capped at a fixed small total so it can never exceed VMEM.
        out2 = pl.pallas_call(
            _norm_kernel_whole,
            out_shape=jax.ShapeDtypeStruct((R_total, HW), x.dtype),
            cost_estimate=cost,
        )(scale_flat.reshape(R_total, 1), bias_flat.reshape(R_total, 1), x2)
        return out2.reshape(N, C, H, W)

    # ---------------- Tiled path ----------------
    # Column tiling only if even an 8-row slab blows the budget (huge spatial planes).
    if 8 * HW * itemsize <= target_tile_bytes or HW <= 128:
        cols_per_tile = HW
    else:
        cols_per_tile = max(128, (target_tile_bytes // (8 * itemsize) // 128) * 128)
        cols_per_tile = min(cols_per_tile, HW)

    rows_per_tile = max(8, (target_tile_bytes // (cols_per_tile * itemsize) // 8) * 8)
    rows_per_tile = min(rows_per_tile, _round_up(R_total, 8))

    n_row_blocks = pl.cdiv(R_total, rows_per_tile)
    if n_row_blocks == 1 and R_total > 8:
        # Ensure >= 2 row blocks so both v7x TensorCores get work.
        rows_per_tile = max(8, _round_up((R_total + 1) // 2, 8))
        if rows_per_tile >= R_total:
            rows_per_tile = max(8, rows_per_tile - 8)
        n_row_blocks = pl.cdiv(R_total, rows_per_tile)
    n_col_blocks = pl.cdiv(HW, cols_per_tile)

    # Pad scale/bias rows so the in-kernel dynamic slice is always in-bounds
    # (pad rows correspond to padded output rows that are never written back).
    R_pad = n_row_blocks * rows_per_tile
    pad = R_pad - R_total
    if pad:
        scale_flat = jnp.concatenate([scale_flat, jnp.ones((pad,), x.dtype)])
        bias_flat = jnp.concatenate([bias_flat, jnp.zeros((pad,), x.dtype)])
    scale_rows = scale_flat.reshape(R_pad, 1)
    bias_rows = bias_flat.reshape(R_pad, 1)

    out2 = pl.pallas_call(
        _norm_kernel_tiled,
        out_shape=jax.ShapeDtypeStruct((R_total, HW), x.dtype),
        grid=(n_row_blocks, n_col_blocks),
        in_specs=[
            # VMEM-resident scale/bias: constant block index -> DMA'd once, not per step.
            pl.BlockSpec((R_pad, 1), lambda i, j: (0, 0)),
            pl.BlockSpec((R_pad, 1), lambda i, j: (0, 0)),
            pl.BlockSpec((rows_per_tile, cols_per_tile), lambda i, j: (i, j)),
        ],
        out_specs=pl.BlockSpec((rows_per_tile, cols_per_tile), lambda i, j: (i, j)),
        compiler_params=pltpu.CompilerParams(
            # All blocks independent -> shard across v7x's two TensorCores.
            dimension_semantics=("parallel", "parallel"),
            vmem_limit_bytes=vmem_limit_bytes,
        ),
        cost_estimate=cost,
    )(scale_rows, bias_rows, x2)

    return out2.reshape(N, C, H, W)


if __name__ == "__main__":
    key = jax.random.PRNGKey(0)
    mean = jnp.array([0.485, 0.456, 0.406], dtype=jnp.float32)
    std = jnp.array([0.229, 0.224, 0.225], dtype=jnp.float32)

    def ref_norm(x):
        # Mirrors the PyTorch permute/sub/div/permute.
        return jnp.transpose(
            (jnp.transpose(x, (0, 2, 3, 1)) - mean) / std, (0, 3, 1, 2)
        )

    k1, k2, k3 = jax.random.split(key, 3)

    # 1) Small shape -> single-block (no-grid) fast path.
    x_small = jax.random.uniform(k1, (2, 3, 16, 16), dtype=jnp.float32)
    out_small = jax.block_until_ready(imagenet_norm(x_small, mean, std))
    assert out_small.shape == x_small.shape and out_small.dtype == x_small.dtype
    assert jnp.allclose(out_small, ref_norm(x_small), rtol=1e-5, atol=1e-6)

    # 2) Force the tiled path with tiny tiles -> 2-D grid (row + column blocks),
    #    VMEM-resident scale/bias sliced per row block.
    x_big = jax.random.uniform(k2, (8, 3, 16, 128), dtype=jnp.float32)
    out_big = jax.block_until_ready(
        imagenet_norm(x_big, mean, std, target_tile_bytes=16 * 1024,
                      fast_path_max_bytes=0)
    )
    assert jnp.allclose(out_big, ref_norm(x_big), rtol=1e-5, atol=1e-6)

    # 3) Tiled path with a partial last row block (R_total=9, not a multiple of 8)
    #    -> exercises the scale/bias padding + partial-tile writeback.
    x_odd = jax.random.uniform(k3, (3, 3, 16, 128), dtype=jnp.float32)
    out_odd = jax.block_until_ready(
        imagenet_norm(x_odd, mean, std, target_tile_bytes=16 * 1024,
                      fast_path_max_bytes=0)
    )
    assert jnp.allclose(out_odd, ref_norm(x_odd), rtol=1e-5, atol=1e-6)

    print("KERNEL_OK")
</pallas_src>

<mosaic_0001>
module attributes {stable_mosaic.version = 11 : i64} {
  func.func @_norm_kernel_whole(%arg0: memref<6x1xf32, #tpu.memory_space<vmem>>, %arg1: memref<6x1xf32, #tpu.memory_space<vmem>>, %arg2: memref<6x256xf32, #tpu.memory_space<vmem>>, %arg3: memref<6x256xf32, #tpu.memory_space<vmem>>) attributes {dimension_semantics = [], scalar_prefetch = 0 : i64, scratch_operands = 0 : i64, tpu.core_type = #tpu.core_type<tc>} {
    %c0 = arith.constant 0 : index
    %c0_0 = arith.constant 0 : index
    %0 = vector.load %arg2[%c0, %c0_0] : memref<6x256xf32, #tpu.memory_space<vmem>>, vector<6x256xf32>
    %c0_1 = arith.constant 0 : index
    %c0_2 = arith.constant 0 : index
    %1 = vector.load %arg0[%c0_1, %c0_2] : memref<6x1xf32, #tpu.memory_space<vmem>>, vector<6x1xf32>
    %2 = vector.broadcast %1 : vector<6x1xf32> to vector<6x256xf32>
    %3 = arith.mulf %0, %2 : vector<6x256xf32>
    %c0_3 = arith.constant 0 : index
    %c0_4 = arith.constant 0 : index
    %4 = vector.load %arg1[%c0_3, %c0_4] : memref<6x1xf32, #tpu.memory_space<vmem>>, vector<6x1xf32>
    %5 = vector.broadcast %4 : vector<6x1xf32> to vector<6x256xf32>
    %6 = arith.addf %3, %5 : vector<6x256xf32>
    %c0_5 = arith.constant 0 : index
    %c0_6 = arith.constant 0 : index
    %7 = vector.load %arg3[%c0_5, %c0_6] : memref<6x256xf32, #tpu.memory_space<vmem>>, vector<6x256xf32>
    tpu.vector_store %arg3[%c0_5, %c0_6], %6 {strides = array<i32>} : memref<6x256xf32, #tpu.memory_space<vmem>>, vector<6x256xf32>,
    return
  }
}

</mosaic_0001>

<bundles_post_ra>
// kernel: tpu_custom_call.1
= control target key start
LH: loop header
LB: loop body
LE: loop exit
PB: predicated region body
PF: predicated region fallthrough
CT: control target
= control target key end

     0   :  { %v76_v1 = vmov 0   ;;  %s122_s0 = inlined_call_operand.vmem [shape: f32[6,1], index: 0, kind: input, shape index: {}]   ;;  %s123_s1 = inlined_call_operand.vmem [shape: f32[6,1], index: 1, kind: input, shape index: {}]   ;;  %s124_s2 = inlined_call_operand.vmem [shape: f32[6,256], index: 2, kind: input, shape index: {}]   ;;  %s125_s3 = inlined_call_operand.hbm [shape: f32[6,256], index: 3, kind: output, shape index: {}]  }
   0x1   :  { %v17_v0 = vld [vmem:[%s122_s0] sm:$0x3f]  ;;  %51 = vset.pattern.permute.xlu0 %v76_v1 }
   0x2   :  { %8 = vsyncpa [#allocation3], 0  ;;  %20 = vperm.xlu0 %51, %v17_v0   ;;  %v25_v2 = vld [vmem:[%s123_s1] sm:$0x3f]  ;;  %v16_v5 = vld [vmem:[%s124_s2 + $0x8] sm:$0x3f] }
   0x3   :  { %v15_v4 = vld [vmem:[%s124_s2] sm:$0x3f]  ;;  %s77_s20 = smov [#allocation2]  }
   0x4   :  { %s41_s0 = sshll.u32 %s77_s20, 4  ;;  %s42_s0 = int_to_ptr.vmem [resolvable:$true] %s41_s0 }
   0x5   :  { %s52_s1 = scalar_lea.vmem %s42_s0, 256  ;;  %p57_p1 = scmp.lt.s32.totalorder %s42_s0, %s42_s0 }
   0x6   :  { %28 = vperm.xlu0 %51, %v25_v2   ;;  %p53_p0 = scmp.ne.s32.totalorder %s42_s0, %s52_s1  ;;  %p58_p2 = scmp.lt.s32.totalorder %s52_s1, %s52_s1 }
   0x8   :  { %p59_p3 = por %p58_p2, %p57_p1 }
   0xa   :  { %p60_p4 = pnand %p59_p3, %p53_p0 }
  0x81   :  { %v21_v3 = vpop.permute.xlu0 %20 }
  0x82   :  { %v23_v6 = vmul.f32 %v21_v3, %v15_v4  ;;  %v24_v7 = vmul.f32 %v21_v3, %v16_v5 }
  0x85   :  { %v29_v8 = vpop.permute.xlu0 %28 }
  0x86   :  { %v31_v9 = vadd.f32 %v29_v8, %v23_v6  ;;  %v32_v10 = vadd.f32 %v29_v8, %v24_v7 }
  0x88   :  { %33 = vst [vmem:[#allocation2] sm:$0x3f] %v31_v9  ;;  %34 = vst [vmem:[#allocation2 + $0x8] sm:$0x3f] %v32_v10 }
  0x89   :  { %63 = shalt.err (!%p60_p4)
}
  0x8a   :  { %s64_s2 = scalar_lea.hbm %s125_s3, 256 }
  0x8b   :  { %p65_p5 = scmp.ne.s32.totalorder %s125_s3, %s64_s2  ;;  %p68_p6 = scmp.lt.u32.totalorder %s64_s2, %s125_s3 }
  0x8d   :  { %p70_p7 = pnand %p68_p6, %p65_p5 }
  0x8f   :  { %73 = shalt.err (!%p70_p7)
}
  0x90   :  { %44 = dma.vmem_to_hbm [thread:$0]  %s42_s0, 256, %s125_s3, [#allocation3]  }
  0x91   :  { %74 = dma.done.wait [#allocation3], 256  }
  0x92   :  { %75 = vsyncadd [#allocation3], 4294967040 }
  0x93   :  { %48 = vsyncpa [#allocation3], 1 }

</bundles_post_ra>
